<compile_context>
chip_gen: v7x
topology: tpu7x:2x2x1
jax: 0.10.0
libtpu: 0.0.40
codegen_flags: <defaults>
</compile_context>

<pallas_src>
import jax
import jax.numpy as jnp
from jax.experimental import pallas as pl
from jax.experimental.pallas import tpu as pltpu


def _critic_kernel(obs_ref, goal_ref, act_ref,
                   w1o_ref, w1g_ref, w1a_ref, b1_ref,
                   w2_ref, b2_ref, w3_ref, b3_ref,
                   o_ref):
    cdt = w1o_ref.dtype  # MXU input dtype (bf16 by default, f32 optional)

    # Layer 1: fused concat -> three accumulating MXU dots (f32 accumulator).
    h1 = jnp.dot(obs_ref[...].astype(cdt), w1o_ref[...],
                 preferred_element_type=jnp.float32)
    h1 = h1 + jnp.dot(goal_ref[...].astype(cdt), w1g_ref[...],
                      preferred_element_type=jnp.float32)
    h1 = h1 + jnp.dot(act_ref[...].astype(cdt), w1a_ref[...],
                      preferred_element_type=jnp.float32)
    h1 = jnp.maximum(h1 + b1_ref[...], 0.0)

    # Layer 2
    h2 = jnp.dot(h1.astype(cdt), w2_ref[...],
                 preferred_element_type=jnp.float32)
    h2 = jnp.maximum(h2 + b2_ref[...], 0.0)

    # Q head
    q = jnp.dot(h2.astype(cdt), w3_ref[...],
                preferred_element_type=jnp.float32)
    o_ref[...] = (q + b3_ref[...]).astype(o_ref.dtype)


def critic_forward(obs, goal, actions, params, *, tile_b=256, use_bf16=True):
    """obs: (B, ob), goal: (B, goal), actions: (B, act); returns (B, A) f32."""
    B, d_obs = obs.shape
    d_goal = goal.shape[1]
    d_act = actions.shape[1]
    A = params["w3"].shape[1]

    cdt = jnp.bfloat16 if use_bf16 else jnp.float32
    w1o = params["w1_obs"].astype(cdt)
    w1g = params["w1_goal"].astype(cdt)
    w1a = params["w1_act"].astype(cdt)
    w2 = params["w2"].astype(cdt)
    w3 = params["w3"].astype(cdt)
    b1, b2, b3 = params["b1"], params["b2"], params["b3"]

    # Batch tile: multiple of 8 (sublane) or the full batch if B is small.
    tb = min(tile_b, B)
    grid = (pl.cdiv(B, tb),)

    def batch_spec(cols):
        # Tiled along batch; pipelined / double-buffered by Pallas.
        return pl.BlockSpec((tb, cols), lambda i: (i, 0))

    def resident_spec(arr):
        # Grid-invariant block: DMA'd once, stays resident in VMEM across steps.
        return pl.BlockSpec(arr.shape, lambda i: tuple(0 for _ in arr.shape))

    grid_spec = pl.GridSpec(
        grid=grid,
        in_specs=[batch_spec(d_obs), batch_spec(d_goal), batch_spec(d_act),
                  resident_spec(w1o), resident_spec(w1g), resident_spec(w1a),
                  resident_spec(b1),
                  resident_spec(w2), resident_spec(b2),
                  resident_spec(w3), resident_spec(b3)],
        out_specs=pl.BlockSpec((tb, A), lambda i: (i, 0)),
    )

    return pl.pallas_call(
        _critic_kernel,
        out_shape=jax.ShapeDtypeStruct((B, A), jnp.float32),
        grid_spec=grid_spec,
        compiler_params=pltpu.CompilerParams(
            # Batch axis is independent -> shard across both TCs on v7x.
            dimension_semantics=("parallel",),
        ),
    )(obs, goal, actions, w1o, w1g, w1a, b1, w2, b2, w3, b3)


def critic(obs, goal, actions, params, **kw):
    """Mirrors Critic.forward's cat try/except: 1-D inputs = single sample
    (cat along dim 0), 2-D inputs = batched (cat along dim 1, fused in-kernel)."""
    squeeze = False
    if obs.ndim == 1:
        obs, goal, actions = obs[None], goal[None], actions[None]
        squeeze = True
    q = critic_forward(obs, goal, actions, params, **kw)
    return q[0] if squeeze else q


def init_critic_params(key, ob_shape, goal_shape, action_space, hidden_dims):
    """Deterministic synthetic parameters.

    PyTorch stores Linear weights as (out, in); here they are kept transposed
    (in, out) for x @ W, and w1 is pre-split into obs/goal/action slabs so the
    concat can be fused into the kernel as three accumulating matmuls.
    NOTE: orthogonal init from init_weight() is not reproduced (not part of
    the forward pass); simple scaled-normal init is used instead.
    """
    d_in = ob_shape + goal_shape + action_space
    k1, k2, k3 = jax.random.split(key, 3)
    w1 = jax.random.normal(k1, (d_in, hidden_dims), jnp.float32) * 0.1
    w2 = jax.random.normal(k2, (hidden_dims, hidden_dims), jnp.float32) * 0.1
    w3 = jax.random.normal(k3, (hidden_dims, action_space), jnp.float32) * 0.1
    return {
        "w1_obs": w1[:ob_shape],
        "w1_goal": w1[ob_shape:ob_shape + goal_shape],
        "w1_act": w1[ob_shape + goal_shape:],
        "b1": jnp.zeros((1, hidden_dims), jnp.float32),
        "w2": w2,
        "b2": jnp.zeros((1, hidden_dims), jnp.float32),
        "w3": w3,
        "b3": jnp.zeros((1, action_space), jnp.float32),
    }


def critic_reference(obs, goal, actions, params, use_bf16=True):
    """Pure-JAX reference with the same dtype policy as the kernel."""
    cdt = jnp.bfloat16 if use_bf16 else jnp.float32

    def mm(a, w):
        return jax.lax.dot(a.astype(cdt), w.astype(cdt),
                           preferred_element_type=jnp.float32)

    h1 = jnp.maximum(mm(obs, params["w1_obs"]) + mm(goal, params["w1_goal"])
                     + mm(actions, params["w1_act"]) + params["b1"], 0.0)
    h2 = jnp.maximum(mm(h1, params["w2"]) + params["b2"], 0.0)
    return mm(h2, params["w3"]) + params["b3"]


if __name__ == "__main__":
    # Small shapes consistent with the module's forward.
    batch = 2
    ob_shape, goal_shape, action_space, hidden_dims = 16, 8, 4, 32

    key = jax.random.PRNGKey(0)
    k_obs, k_goal, k_act, k_par = jax.random.split(key, 4)
    obs = jax.random.normal(k_obs, (batch, ob_shape), jnp.float32)
    goal = jax.random.normal(k_goal, (batch, goal_shape), jnp.float32)
    actions = jax.random.normal(k_act, (batch, action_space), jnp.float32)

    params = init_critic_params(k_par, ob_shape, goal_shape, action_space,
                                hidden_dims)

    q = critic(obs, goal, actions, params)
    jax.block_until_ready(q)
    assert q.shape == (batch, action_space)

    # Matched-precision reference (bf16 MXU inputs, f32 accumulate): tight.
    q_ref = critic_reference(obs, goal, actions, params, use_bf16=True)
    assert jnp.allclose(q, q_ref, atol=1e-3, rtol=1e-3), \
        float(jnp.max(jnp.abs(q - q_ref)))

    # Full-f32 module semantics: bf16 weight cast contributes ~O(1e-3) abs err.
    q_f32 = critic_reference(obs, goal, actions, params, use_bf16=False)
    assert jnp.allclose(q, q_f32, atol=5e-2, rtol=5e-2), \
        float(jnp.max(jnp.abs(q - q_f32)))

    print("KERNEL_OK")
</pallas_src>

<mosaic_0001>
module attributes {stable_mosaic.version = 11 : i64} {
  func.func @_critic_kernel(%arg0: i32, %arg1: memref<2x16xf32, #tpu.memory_space<vmem>>, %arg2: memref<2x8xf32, #tpu.memory_space<vmem>>, %arg3: memref<2x4xf32, #tpu.memory_space<vmem>>, %arg4: memref<16x32xbf16, #tpu.memory_space<vmem>>, %arg5: memref<8x32xbf16, #tpu.memory_space<vmem>>, %arg6: memref<4x32xbf16, #tpu.memory_space<vmem>>, %arg7: memref<1x32xf32, #tpu.memory_space<vmem>>, %arg8: memref<32x32xbf16, #tpu.memory_space<vmem>>, %arg9: memref<1x32xf32, #tpu.memory_space<vmem>>, %arg10: memref<32x4xbf16, #tpu.memory_space<vmem>>, %arg11: memref<1x4xf32, #tpu.memory_space<vmem>>, %arg12: memref<2x4xf32, #tpu.memory_space<vmem>>) attributes {dimension_semantics = [#tpu.dimension_semantics<parallel>], iteration_bounds = array<i64: 1>, scalar_prefetch = 0 : i64, scratch_operands = 0 : i64, tpu.core_type = #tpu.core_type<tc>, window_params = [{transform_indices = @transform_0, window_bounds = array<i64: 2, 16>}, {transform_indices = @transform_1, window_bounds = array<i64: 2, 8>}, {transform_indices = @transform_2, window_bounds = array<i64: 2, 4>}, {pipeline_mode = #tpu.pipeline_mode<synchronous>, transform_indices = @transform_3, window_bounds = array<i64: 16, 32>}, {pipeline_mode = #tpu.pipeline_mode<synchronous>, transform_indices = @transform_4, window_bounds = array<i64: 8, 32>}, {pipeline_mode = #tpu.pipeline_mode<synchronous>, transform_indices = @transform_5, window_bounds = array<i64: 4, 32>}, {pipeline_mode = #tpu.pipeline_mode<synchronous>, transform_indices = @transform_6, window_bounds = array<i64: 1, 32>}, {pipeline_mode = #tpu.pipeline_mode<synchronous>, transform_indices = @transform_7, window_bounds = array<i64: 32, 32>}, {pipeline_mode = #tpu.pipeline_mode<synchronous>, transform_indices = @transform_8, window_bounds = array<i64: 1, 32>}, {pipeline_mode = #tpu.pipeline_mode<synchronous>, transform_indices = @transform_9, window_bounds = array<i64: 32, 4>}, {pipeline_mode = #tpu.pipeline_mode<synchronous>, transform_indices = @transform_10, window_bounds = array<i64: 1, 4>}, {transform_indices = @transform_11, window_bounds = array<i64: 2, 4>}]} {
    %c0 = arith.constant 0 : index
    %c0_0 = arith.constant 0 : index
    %0 = vector.load %arg1[%c0, %c0_0] : memref<2x16xf32, #tpu.memory_space<vmem>>, vector<2x16xf32>
    %1 = arith.truncf %0 : vector<2x16xf32> to vector<2x16xbf16>
    %c0_1 = arith.constant 0 : index
    %c0_2 = arith.constant 0 : index
    %2 = vector.load %arg4[%c0_1, %c0_2] : memref<16x32xbf16, #tpu.memory_space<vmem>>, vector<16x32xbf16>
    %cst = arith.constant dense<0.000000e+00> : vector<2x32xf32>
    %3 = tpu.matmul %1, %2, %cst {dimension_numbers = #tpu.dot_dimension_numbers<[1], [0], [0], [1], [0, 0, 1, 1], [], []>} : vector<2x16xbf16>, vector<16x32xbf16>, vector<2x32xf32> -> vector<2x32xf32>
    %c0_3 = arith.constant 0 : index
    %c0_4 = arith.constant 0 : index
    %4 = vector.load %arg2[%c0_3, %c0_4] : memref<2x8xf32, #tpu.memory_space<vmem>>, vector<2x8xf32>
    %5 = arith.truncf %4 : vector<2x8xf32> to vector<2x8xbf16>
    %c0_5 = arith.constant 0 : index
    %c0_6 = arith.constant 0 : index
    %6 = vector.load %arg5[%c0_5, %c0_6] : memref<8x32xbf16, #tpu.memory_space<vmem>>, vector<8x32xbf16>
    %cst_7 = arith.constant dense<0.000000e+00> : vector<2x32xf32>
    %7 = tpu.matmul %5, %6, %cst_7 {dimension_numbers = #tpu.dot_dimension_numbers<[1], [0], [0], [1], [0, 0, 1, 1], [], []>} : vector<2x8xbf16>, vector<8x32xbf16>, vector<2x32xf32> -> vector<2x32xf32>
    %8 = arith.addf %3, %7 : vector<2x32xf32>
    %c0_8 = arith.constant 0 : index
    %c0_9 = arith.constant 0 : index
    %9 = vector.load %arg3[%c0_8, %c0_9] : memref<2x4xf32, #tpu.memory_space<vmem>>, vector<2x4xf32>
    %10 = arith.truncf %9 : vector<2x4xf32> to vector<2x4xbf16>
    %c0_10 = arith.constant 0 : index
    %c0_11 = arith.constant 0 : index
    %11 = vector.load %arg6[%c0_10, %c0_11] : memref<4x32xbf16, #tpu.memory_space<vmem>>, vector<4x32xbf16>
    %cst_12 = arith.constant dense<0.000000e+00> : vector<2x32xf32>
    %12 = tpu.matmul %10, %11, %cst_12 {dimension_numbers = #tpu.dot_dimension_numbers<[1], [0], [0], [1], [0, 0, 1, 1], [], []>} : vector<2x4xbf16>, vector<4x32xbf16>, vector<2x32xf32> -> vector<2x32xf32>
    %13 = arith.addf %8, %12 : vector<2x32xf32>
    %c0_13 = arith.constant 0 : index
    %c0_14 = arith.constant 0 : index
    %14 = vector.load %arg7[%c0_13, %c0_14] : memref<1x32xf32, #tpu.memory_space<vmem>>, vector<1x32xf32>
    %15 = vector.broadcast %14 : vector<1x32xf32> to vector<2x32xf32>
    %16 = arith.addf %13, %15 : vector<2x32xf32>
    %cst_15 = arith.constant 0.000000e+00 : f32
    %17 = vector.broadcast %cst_15 : f32 to vector<2x32xf32>
    %18 = arith.maximumf %16, %17 : vector<2x32xf32>
    %19 = arith.truncf %18 : vector<2x32xf32> to vector<2x32xbf16>
    %c0_16 = arith.constant 0 : index
    %c0_17 = arith.constant 0 : index
    %20 = vector.load %arg8[%c0_16, %c0_17] : memref<32x32xbf16, #tpu.memory_space<vmem>>, vector<32x32xbf16>
    %cst_18 = arith.constant dense<0.000000e+00> : vector<2x32xf32>
    %21 = tpu.matmul %19, %20, %cst_18 {dimension_numbers = #tpu.dot_dimension_numbers<[1], [0], [0], [1], [0, 0, 1, 1], [], []>} : vector<2x32xbf16>, vector<32x32xbf16>, vector<2x32xf32> -> vector<2x32xf32>
    %c0_19 = arith.constant 0 : index
    %c0_20 = arith.constant 0 : index
    %22 = vector.load %arg9[%c0_19, %c0_20] : memref<1x32xf32, #tpu.memory_space<vmem>>, vector<1x32xf32>
    %23 = vector.broadcast %22 : vector<1x32xf32> to vector<2x32xf32>
    %24 = arith.addf %21, %23 : vector<2x32xf32>
    %cst_21 = arith.constant 0.000000e+00 : f32
    %25 = vector.broadcast %cst_21 : f32 to vector<2x32xf32>
    %26 = arith.maximumf %24, %25 : vector<2x32xf32>
    %27 = arith.truncf %26 : vector<2x32xf32> to vector<2x32xbf16>
    %c0_22 = arith.constant 0 : index
    %c0_23 = arith.constant 0 : index
    %28 = vector.load %arg10[%c0_22, %c0_23] : memref<32x4xbf16, #tpu.memory_space<vmem>>, vector<32x4xbf16>
    %cst_24 = arith.constant dense<0.000000e+00> : vector<2x4xf32>
    %29 = tpu.matmul %27, %28, %cst_24 {dimension_numbers = #tpu.dot_dimension_numbers<[1], [0], [0], [1], [0, 0, 1, 1], [], []>} : vector<2x32xbf16>, vector<32x4xbf16>, vector<2x4xf32> -> vector<2x4xf32>
    %c0_25 = arith.constant 0 : index
    %c0_26 = arith.constant 0 : index
    %30 = vector.load %arg11[%c0_25, %c0_26] : memref<1x4xf32, #tpu.memory_space<vmem>>, vector<1x4xf32>
    %31 = vector.broadcast %30 : vector<1x4xf32> to vector<2x4xf32>
    %32 = arith.addf %29, %31 : vector<2x4xf32>
    %c0_27 = arith.constant 0 : index
    %c0_28 = arith.constant 0 : index
    %33 = vector.load %arg12[%c0_27, %c0_28] : memref<2x4xf32, #tpu.memory_space<vmem>>, vector<2x4xf32>
    tpu.vector_store %arg12[%c0_27, %c0_28], %32 {strides = array<i32>} : memref<2x4xf32, #tpu.memory_space<vmem>>, vector<2x4xf32>,
    return
  }
  func.func @transform_0(%arg0: i32) -> (i32, i32) {
    %c0_i32 = arith.constant 0 : i32
    %c0_i32_0 = arith.constant 0 : i32
    return %arg0, %c0_i32 : i32, i32
  }
  func.func @transform_1(%arg0: i32) -> (i32, i32) {
    %c0_i32 = arith.constant 0 : i32
    %c0_i32_0 = arith.constant 0 : i32
    return %arg0, %c0_i32 : i32, i32
  }
  func.func @transform_2(%arg0: i32) -> (i32, i32) {
    %c0_i32 = arith.constant 0 : i32
    %c0_i32_0 = arith.constant 0 : i32
    return %arg0, %c0_i32 : i32, i32
  }
  func.func @transform_3(%arg0: i32) -> (i32, i32) {
    %c0_i32 = arith.constant 0 : i32
    %c0_i32_0 = arith.constant 0 : i32
    %c0_i32_1 = arith.constant 0 : i32
    return %c0_i32, %c0_i32_0 : i32, i32
  }
  func.func @transform_4(%arg0: i32) -> (i32, i32) {
    %c0_i32 = arith.constant 0 : i32
    %c0_i32_0 = arith.constant 0 : i32
    %c0_i32_1 = arith.constant 0 : i32
    return %c0_i32, %c0_i32_0 : i32, i32
  }
  func.func @transform_5(%arg0: i32) -> (i32, i32) {
    %c0_i32 = arith.constant 0 : i32
    %c0_i32_0 = arith.constant 0 : i32
    %c0_i32_1 = arith.constant 0 : i32
    return %c0_i32, %c0_i32_0 : i32, i32
  }
  func.func @transform_6(%arg0: i32) -> (i32, i32) {
    %c0_i32 = arith.constant 0 : i32
    %c0_i32_0 = arith.constant 0 : i32
    %c0_i32_1 = arith.constant 0 : i32
    return %c0_i32, %c0_i32_0 : i32, i32
  }
  func.func @transform_7(%arg0: i32) -> (i32, i32) {
    %c0_i32 = arith.constant 0 : i32
    %c0_i32_0 = arith.constant 0 : i32
    %c0_i32_1 = arith.constant 0 : i32
    return %c0_i32, %c0_i32_0 : i32, i32
  }
  func.func @transform_8(%arg0: i32) -> (i32, i32) {
    %c0_i32 = arith.constant 0 : i32
    %c0_i32_0 = arith.constant 0 : i32
    %c0_i32_1 = arith.constant 0 : i32
    return %c0_i32, %c0_i32_0 : i32, i32
  }
  func.func @transform_9(%arg0: i32) -> (i32, i32) {
    %c0_i32 = arith.constant 0 : i32
    %c0_i32_0 = arith.constant 0 : i32
    %c0_i32_1 = arith.constant 0 : i32
    return %c0_i32, %c0_i32_0 : i32, i32
  }
  func.func @transform_10(%arg0: i32) -> (i32, i32) {
    %c0_i32 = arith.constant 0 : i32
    %c0_i32_0 = arith.constant 0 : i32
    %c0_i32_1 = arith.constant 0 : i32
    return %c0_i32, %c0_i32_0 : i32, i32
  }
  func.func @transform_11(%arg0: i32) -> (i32, i32) {
    %c0_i32 = arith.constant 0 : i32
    %c0_i32_0 = arith.constant 0 : i32
    return %arg0, %c0_i32 : i32, i32
  }
}

</mosaic_0001>

<bundles_post_ra>
// kernel: tpu_custom_call.1
= control target key start
LH: loop header
LB: loop body
LE: loop exit
PB: predicated region body
PF: predicated region fallthrough
CT: control target
= control target key end

     0   :  { %16 = vsyncpa [#allocation3], 0  ;;  %s618_s0 = inlined_call_operand.vmem [shape: f32[2,16], index: 0, kind: input, shape index: {}]   ;;  %s619_s1 = inlined_call_operand.vmem [shape: f32[2,8], index: 1, kind: input, shape index: {}]   ;;  %s620_s2 = inlined_call_operand.hbm [shape: f32[2,4], index: 2, kind: input, shape index: {}]   ;;  %s621_s3 = inlined_call_operand.vmem [shape: bf16[16,32], index: 3, kind: input, shape index: {}]   ;;  %s622_s4 = inlined_call_operand.vmem [shape: bf16[8,32], index: 4, kind: input, shape index: {}]   ;;  %s623_s5 = inlined_call_operand.vmem [shape: bf16[4,32], index: 5, kind: input, shape index: {}]   ;;  %s624_s6 = inlined_call_operand.vmem [shape: f32[1,32], index: 6, kind: input, shape index: {}]   ;;  %s625_s7 = inlined_call_operand.vmem [shape: bf16[32,32], index: 7, kind: input, shape index: {}]   ;;  %s626_s8 = inlined_call_operand.vmem [shape: f32[1,32], index: 8, kind: input, shape index: {}]   ;;  %s627_s9 = inlined_call_operand.vmem [shape: bf16[32,4], index: 9, kind: input, shape index: {}]   ;;  %s628_s10 = inlined_call_operand.vmem [shape: f32[1,4], index: 10, kind: input, shape index: {}]   ;;  %s629_s11 = inlined_call_operand.hbm [shape: f32[2,4], index: 11, kind: output, shape index: {}]  }
   0x1   :  { %17 = vsyncpa [#allocation4], 0  ;;  %s487_s17 = smov [#allocation2]   ;;  %s439_s21 = scalar_lea.hbm %s620_s2, 32 }
   0x2   :  { %s28_s18 = sshll.u32 %s487_s17, 4  ;;  %p440_p0 = scmp.ne.s32.totalorder %s620_s2, %s439_s21  ;;  %s29_s18 = int_to_ptr.vmem [resolvable:$true] %s28_s18 }
   0x3   :  { %p443_p1 = scmp.lt.u32.totalorder %s439_s21, %s620_s2 }
   0x5   :  { %p445_p2 = pnand %p443_p1, %p440_p0 }
   0x7   :  { %448 = shalt.err (!%p445_p2)
}
   0x8   :  { %s449_s26 = scalar_lea.vmem %s29_s18, 32  ;;  %p454_p4 = scmp.lt.s32.totalorder %s29_s18, %s29_s18 }
   0x9   :  { %p450_p3 = scmp.ne.s32.totalorder %s29_s18, %s449_s26  ;;  %p455_p5 = scmp.lt.s32.totalorder %s449_s26, %s449_s26 }
   0xb   :  { %p456_p6 = por %p455_p5, %p454_p4 }
   0xd   :  { %p457_p7 = pnand %p456_p6, %p450_p3 }
   0xf   :  { %460 = shalt.err (!%p457_p7)
}
  0x10   :  { %31 = dma.hbm_to_vmem [thread:$0]  %s620_s2, 32, %s29_s18, [#allocation3]  }
  0x11   :  { %483 = dma.done.wait [#allocation3], 32  }
  0x12   :  { %484 = vsyncadd [#allocation3], 4294967264  ;;  %v488_v0 = vmov 0.0   ;;  %vm489_vm0 = vmmov 0   ;;  %vm63_vm1 = vcmask 1043456   ;;  %vm164_vm2 = vcmask 1041408  }
  0x13   :  { %396 = vmatprep.subr.bf16.mxu0 %v488_v0  ;;  %402 = vmatprep.subr.bf16.mxu1 %v488_v0  ;;  %v58_v1 = vld [vmem:[%s622_s4] sm:$0xf]  ;;  %vm59_vm3 = vcmask 64512   ;;  %vm113_vm4 = vcmask 130048   ;;  %vm160_vm5 = vcmask 31744   ;;  %v436_v13 = vld [vmem:[%s625_s7 + $0x8] sm:$0xff]  }
  0x14   :  { %398 = vmatprep.mubr.msk.bf16.mxu0 %vm489_vm0, %v488_v0  ;;  %404 = vmatprep.mubr.msk.bf16.mxu1 %vm489_vm0, %v488_v0  ;;  %v65_v2 = vsel %vm63_vm1, %v58_v1, 0  ;;  %v434_v3 = vld [vmem:[%s621_s3] sm:$0xff]   ;;  %vm242_vm6 = vcmask 261120   ;;  %v438_v33 = vld [vmem:[%s627_s9 + $0x8] sm:$0xff]   ;;  %s490_s26 = smov [#allocation5]   ;;  %vm354_vm7 = vcmask 25600  }
  0x15   :  { %v56_v4 = vld [vmem:[%s619_s1] sm:$0x3]  ;;  %397 = vmatpush3.bf16.msra.mxu0 %v65_v2  ;;  %403 = vmatpush3.bf16.msra.mxu1 %v434_v3 }
  0x16   :  { %v52_v5 = vld [vmem:[%s618_s0] sm:$0x3]  ;;  %v57_v6 = vpack.c.bf16 %v56_v4, %v56_v4  ;;  %408 = vmatprep.subr.bf16.mxu0 %v488_v0  ;;  %414 = vmatprep.subr.bf16.mxu1 %v488_v0 }
  0x17   :  { %v53_v7 = vpack.c.bf16 %v52_v5, %v52_v5  ;;  %v159_v8 = vld [vmem:[%s623_s5] sm:$0x3] }
  0x18   :  { %v166_v9 = vsel %vm164_vm2, %v159_v8, 0  ;;  %399 = vmatmul.mubr.msk.bf16.vlgmr.msra.gmra.mrb[0].mxu0 %vm59_vm3, %v57_v6  ;;  %v157_v10 = vld [vmem:[#allocation2] sm:$0x3] }
  0x19   :  { %405 = vmatmul.mubr.msk.bf16.vlgmr.msra.gmra.mrb[0].mxu1 %vm113_vm4, %v53_v7  ;;  %409 = vmatpush3.bf16.msra.mxu0 %v166_v9  ;;  %v158_v11 = vpack.c.bf16 %v157_v10, %v157_v10  ;;  %v435_v12 = vld [vmem:[%s625_s7] sm:$0xff]  }
  0x1a   :  { %410 = vmatprep.mubr.msk.bf16.mxu0 %vm489_vm0, %v488_v0  ;;  %418 = vmatprep.mubr.msk.bf16.mxu1 %vm489_vm0, %v488_v0  ;;  %v375_v24 = vld [vmem:[%s624_s6] ss:$0 sm:$0xff] }
  0x1b   :  { %422 = vmatprep.subr.bf16.mxu0 %v488_v0  ;;  %415 = vmatpush3.bf16.msra.mxu1 %v435_v12  ;;  %v437_v32 = vld [vmem:[%s627_s9] sm:$0xff]   ;;  %s362_s9 = sshll.u32 %s490_s26, 4  ;;  %s363_s9 = int_to_ptr.vmem [resolvable:$true] %s362_s9 }
  0x1c   :  { %416 = vmatprep.subr.bf16.mxu1 %v488_v0  ;;  %v376_v34 = vld [vmem:[%s626_s8] ss:$0 sm:$0xff]  ;;  %s461_s8 = scalar_lea.vmem %s363_s9, 32  ;;  %p466_p9 = scmp.lt.s32.totalorder %s363_s9, %s363_s9 }
  0x1d   :  { %v380_v42 = vld [vmem:[%s628_s10] ss:$0 sm:$0xff]  ;;  %p462_p8 = scmp.ne.s32.totalorder %s363_s9, %s461_s8  ;;  %p467_p10 = scmp.lt.s32.totalorder %s461_s8, %s461_s8 }
  0x1f   :  { %417 = vmatpush3.bf16.msra.mxu1 %v436_v13  ;;  %p468_p11 = por %p467_p10, %p466_p9 }
  0x20   :  { %411 = vmatmul.mubr.msk.bf16.vlgmr.msra.gmra.mrb[4].mxu0 %vm160_vm5, %v158_v11 }
  0x21   :  { %426 = vmatprep.mubr.msk.bf16.mxu0 %vm489_vm0, %v488_v0  ;;  %423 = vmatpush3.bf16.msra.mxu0 %v437_v32  ;;  %p469_p12 = pnand %p468_p11, %p462_p8 }
  0x22   :  { %424 = vmatprep.subr.bf16.mxu0 %v488_v0 }
  0x25   :  { %425 = vmatpush3.bf16.msra.mxu0 %v438_v33 }
  0xeb   :  { %v101_v14 = vpop.f32.mrb[0].mxu0 }
  0xec   :  { %v400_v15 = vpop.f32.mrb[1].mxu0  ;;  %v151_v16 = vpop.f32.mrb[0].mxu1 }
  0xed   :  { %v152_v17 = vadd.f32 %v151_v16, %v101_v14  ;;  %v104_v18 = vpop.f32.mrb[2].mxu0  ;;  %v406_v19 = vpop.f32.mrb[1].mxu1 }
  0xee   :  { %v401_v20 = vpop.f32.mrb[3].mxu0  ;;  %v154_v21 = vpop.f32.mrb[2].mxu1 }
  0xef   :  { %v407_v22 = vpop.f32.mrb[3].mxu1 }
  0xf3   :  { %v202_v23 = vpop.f32.mrb[4].mxu0 }
  0xf4   :  { %v208_v25 = vadd.f32 %v202_v23, %v152_v17  ;;  %v412_v26 = vpop.f32.mrb[5].mxu0 }
  0xf5   :  { %v205_v27 = vpop.f32.mrb[6].mxu0 }
  0xf6   :  { %v216_v28 = vadd.f32 %v375_v24, %v208_v25  ;;  %v413_v29 = vpop.f32.mrb[7].mxu0 }
  0xf8   :  { %v217_v30 = vmax.f32 %v216_v28, 0.0 }
  0xfa   :  { %v218_v31 = vpack.c.bf16 %v217_v30, %v217_v30 }
  0xfc   :  { %419 = vmatmul.mubr.msk.bf16.vlgmr.msra.gmra.mrb[4].mxu1 %vm242_vm6, %v218_v31 }
 0x1cf   :  { %v280_v35 = vpop.f32.mrb[4].mxu1 }
 0x1d0   :  { %v281_v36 = vadd.f32 %v376_v34, %v280_v35  ;;  %v420_v37 = vpop.f32.mrb[5].mxu1 }
 0x1d1   :  { %v283_v38 = vpop.f32.mrb[6].mxu1 }
 0x1d2   :  { %v286_v39 = vmax.f32 %v281_v36, 0.0  ;;  %v421_v40 = vpop.f32.mrb[7].mxu1 }
 0x1d4   :  { %v287_v41 = vpack.c.bf16 %v286_v39, %v286_v39 }
 0x1d6   :  { %427 = vmatmul.mubr.msk.bf16.vlgmr.msra.gmra.mrb[8].mxu0 %vm242_vm6, %v287_v41 }
 0x2a9   :  { %v348_v43 = vpop.f32.mrb[8].mxu0 }
 0x2aa   :  { %v349_v44 = vadd.f32 %v380_v42, %v348_v43  ;;  %v428_v45 = vpop.f32.mrb[9].mxu0 }
 0x2ab   :  { %v351_v46 = vpop.f32.mrb[10].mxu0 }
 0x2ac   :  { %v429_v47 = vpop.f32.mrb[11].mxu0  ;;  %355 = vst.msk [vmem:[#allocation5] sm:$0x3] %vm354_vm7, %v349_v44 }
 0x2ad   :  { %472 = shalt.err (!%p469_p12)
}
 0x2ae   :  { %s473_s10 = scalar_lea.hbm %s629_s11, 32 }
 0x2af   :  { %p474_p13 = scmp.ne.s32.totalorder %s629_s11, %s473_s10  ;;  %p477_p0 = scmp.lt.u32.totalorder %s473_s10, %s629_s11 }
 0x2b1   :  { %p479_p1 = pnand %p477_p0, %p474_p13 }
 0x2b3   :  { %482 = shalt.err (!%p479_p1)
}
 0x2b4   :  { %365 = dma.vmem_to_hbm [thread:$0]  %s363_s9, 32, %s629_s11, [#allocation4]  }
 0x2b5   :  { %485 = dma.done.wait [#allocation4], 32  }
 0x2b6   :  { %486 = vsyncadd [#allocation4], 4294967264 }
 0x2b7   :  { %369 = vsyncpa [#allocation3], 1 }
 0x2b8   :  { %370 = vsyncpa [#allocation4], 1 }

</bundles_post_ra>
